<compile_context>
chip_gen: v7x
topology: tpu7x:2x2x1
jax: 0.10.0
libtpu: 0.0.40
codegen_flags: <defaults>
</compile_context>

<pallas_src>
import functools

import jax
import jax.numpy as jnp
from jax import lax
from jax.experimental import pallas as pl
from jax.experimental.pallas import tpu as pltpu

EPS = 1e-5


# ----------------------------------------------------------------------------
# Kernel 1: fused 1x1-conv + BatchNorm (batch stats) + global max pool
# Lane-dense layout: channels live in the sublane axis, pixels in the lane axis.
# ----------------------------------------------------------------------------
def _conv_bn_pool_kernel(x_ref, wt_ref, bc_ref, g_ref, beta_ref, v1_ref, *, n, p):
    # x_ref : (3, n*p)   padded pixels, pixels-in-lanes
    # wt_ref: (8, 3)     conv weight (out, in)
    # bc/g/beta: (8, 1)
    # v1_ref: (8, n)     per-(channel, sample) pooled output
    x = x_ref[...]
    wt = wt_ref[...]
    # 1x1 conv == per-pixel channel mix; K=3 is tiny, do it as 3 VPU FMAs with
    # sublane/lane broadcasts instead of a padded MXU matmul.
    y = (wt[:, 0:1] * x[0:1, :]
         + wt[:, 1:2] * x[1:2, :]
         + wt[:, 2:3] * x[2:3, :]) + bc_ref[...]          # (8, n*p)
    # BatchNorm2d, training mode: biased batch stats over all N*Hp*Wp pixels.
    mean = jnp.mean(y, axis=1, keepdims=True)             # (8, 1)
    var = jnp.mean((y - mean) ** 2, axis=1, keepdims=True)
    ybn = (y - mean) * lax.rsqrt(var + EPS) * g_ref[...] + beta_ref[...]
    # Global max pool per sample: split the lane axis (p is a multiple of 128
    # for the test shape, so this is a pure vreg-tile regrouping).
    v1_ref[...] = jnp.max(ybn.reshape(ybn.shape[0], n, p), axis=2)   # (8, n)


def conv_bn_pool(x_nchw, wc, bc, gamma, beta):
    n, cin, h, w = x_nchw.shape
    cout = wc.shape[1]
    xp = jnp.pad(x_nchw, ((0, 0), (0, 0), (1, 1), (1, 1)))   # Conv2d padding=1
    hp, wp = h + 2, w + 2
    p = hp * wp
    # (C_in, N*P): channels in sublanes, pixels in lanes (lane-dense).
    x_cm = xp.reshape(n, cin, p).transpose(1, 0, 2).reshape(cin, n * p)
    kernel = functools.partial(_conv_bn_pool_kernel, n=n, p=p)
    v1t = pl.pallas_call(
        kernel,
        out_shape=jax.ShapeDtypeStruct((cout, n), jnp.float32),
    )(x_cm, wc.T, bc.reshape(cout, 1), gamma.reshape(cout, 1),
      beta.reshape(cout, 1))
    return v1t.T                                             # (n, 8)


# ----------------------------------------------------------------------------
# Kernel 2: fused Linear(8->4096) + Linear(4096->4096) + residual add
# 1-D grid over output tiles; W1 resident, W2 streamed with full-K blocks.
# ----------------------------------------------------------------------------
def _mlp_add_kernel(v1_ref, w1_ref, b1_ref, w2_ref, b2_ref, out_ref):
    v1 = v1_ref[...]                                              # (n, 8)
    # v2 = v1 @ W1 + b1 (full width); trivial FLOPs, recomputed per step.
    v2 = jnp.dot(v1, w1_ref[...],
                 preferred_element_type=jnp.float32) + b1_ref[...]  # (n, 4096)
    # v3 tile for this output block (full-K matmul).
    v3 = jnp.dot(v2, w2_ref[...],
                 preferred_element_type=jnp.float32) + b2_ref[...]  # (n, tn)
    # Residual: tile the already-resident v1 across this block's features.
    rep = out_ref.shape[-1] // v1.shape[-1]
    out_ref[...] = v3 + jnp.tile(v1, (1, rep))


def mlp_residual(v1, w1, b1, w2, b2, *, tn=512):
    n, c = v1.shape                     # (N, 8)
    d1 = w1.shape[1]                    # 4096
    d2 = w2.shape[1]                    # 4096
    n_steps = d2 // tn                  # 8 even steps -> megacore-friendly
    itemsize = 4
    cost = pl.CostEstimate(
        flops=2 * n * d1 * d2 + 2 * n * c * d1 * n_steps,
        transcendentals=0,
        bytes_accessed=(d1 * d2 + c * d1 + d1 + d2 + n * c + n * d2) * itemsize,
    )
    return pl.pallas_call(
        _mlp_add_kernel,
        out_shape=jax.ShapeDtypeStruct((n, d2), jnp.float32),
        grid_spec=pltpu.PrefetchScalarGridSpec(
            num_scalar_prefetch=0,
            grid=(n_steps,),
            in_specs=[
                pl.BlockSpec((n, c), lambda j: (0, 0)),      # v1 (resident)
                pl.BlockSpec((c, d1), lambda j: (0, 0)),     # W1 (resident, 128 KiB)
                pl.BlockSpec((1, d1), lambda j: (0, 0)),     # b1 (resident)
                pl.BlockSpec((d1, tn), lambda j: (0, j)),    # W2 full-K block (8 MiB)
                pl.BlockSpec((1, tn), lambda j: (0, j)),     # b2
            ],
            out_specs=pl.BlockSpec((n, tn), lambda j: (0, j)),
        ),
        compiler_params=pltpu.CompilerParams(
            dimension_semantics=("parallel",),
            vmem_limit_bytes=32 * 1024 * 1024,   # ~16.3 MiB live; raise v5e's 16 MiB default
        ),
        cost_estimate=cost,
    )(v1, w1, b1.reshape(1, d1), w2, b2.reshape(1, d2))


def model_forward(x_nchw, params):
    v1 = conv_bn_pool(x_nchw, params["wc"], params["bc"],
                      params["gamma"], params["beta"])
    return mlp_residual(v1, params["w1"], params["b1"],
                        params["w2"], params["b2"])


# ----------------------------------------------------------------------------
# Pure-JAX reference (same math) for a sanity check
# ----------------------------------------------------------------------------
def reference(x_nchw, p):
    xp = jnp.pad(x_nchw, ((0, 0), (0, 0), (1, 1), (1, 1)))
    y = jnp.einsum('nchw,co->nohw', xp, p["wc"]) + p["bc"][None, :, None, None]
    mean = jnp.mean(y, axis=(0, 2, 3), keepdims=True)
    var = jnp.mean((y - mean) ** 2, axis=(0, 2, 3), keepdims=True)
    ybn = ((y - mean) / jnp.sqrt(var + EPS)
           * p["gamma"][None, :, None, None] + p["beta"][None, :, None, None])
    v1 = jnp.max(ybn, axis=(2, 3))                      # (N, 8)
    v2 = v1 @ p["w1"] + p["b1"]
    v3 = v2 @ p["w2"] + p["b2"]
    return v3 + jnp.tile(v1, (1, v3.shape[1] // v1.shape[1]))


if __name__ == "__main__":
    key = jax.random.PRNGKey(0)
    ks = jax.random.split(key, 9)

    # Small shapes consistent with the forward: batch=2, C_in=3, 14x14 spatial
    # (-> 16x16 after padding=1, so the pixel axis is a multiple of 128).
    x = jax.random.normal(ks[0], (2, 3, 14, 14), jnp.float32)

    params = {
        "wc":    jax.random.normal(ks[1], (3, 8), jnp.float32) * 0.3,
        "bc":    jax.random.normal(ks[2], (8,), jnp.float32) * 0.1,
        "gamma": 1.0 + 0.1 * jax.random.normal(ks[3], (8,), jnp.float32),
        "beta":  0.1 * jax.random.normal(ks[4], (8,), jnp.float32),
        "w1":    jax.random.normal(ks[5], (8, 4096), jnp.float32) / jnp.sqrt(8.0),
        "b1":    jax.random.normal(ks[6], (4096,), jnp.float32) * 0.01,
        "w2":    jax.random.normal(ks[7], (4096, 4096), jnp.float32) / 64.0,
        "b2":    jax.random.normal(ks[8], (4096,), jnp.float32) * 0.01,
    }

    out = jax.block_until_ready(model_forward(x, params))
    ref = jax.block_until_ready(reference(x, params))

    err = float(jnp.max(jnp.abs(out - ref)) / (jnp.max(jnp.abs(ref)) + 1.0))
    assert out.shape == (2, 4096), out.shape
    assert err < 1e-2, f"mismatch vs reference: rel-max-err={err}"
    print("KERNEL_OK")
</pallas_src>

<mosaic_0001>
module attributes {stable_mosaic.version = 11 : i64} {
  func.func @_conv_bn_pool_kernel(%arg0: memref<3x512xf32, #tpu.memory_space<vmem>>, %arg1: memref<8x3xf32, #tpu.memory_space<vmem>>, %arg2: memref<8x1xf32, #tpu.memory_space<vmem>>, %arg3: memref<8x1xf32, #tpu.memory_space<vmem>>, %arg4: memref<8x1xf32, #tpu.memory_space<vmem>>, %arg5: memref<8x2xf32, #tpu.memory_space<vmem>>) attributes {dimension_semantics = [], scalar_prefetch = 0 : i64, scratch_operands = 0 : i64, tpu.core_type = #tpu.core_type<tc>} {
    %c0 = arith.constant 0 : index
    %c0_0 = arith.constant 0 : index
    %0 = vector.load %arg0[%c0, %c0_0] : memref<3x512xf32, #tpu.memory_space<vmem>>, vector<3x512xf32>
    %c0_1 = arith.constant 0 : index
    %c0_2 = arith.constant 0 : index
    %1 = vector.load %arg1[%c0_1, %c0_2] : memref<8x3xf32, #tpu.memory_space<vmem>>, vector<8x3xf32>
    %2 = vector.extract_strided_slice %1 {offsets = [0, 0], sizes = [8, 1], strides = [1, 1]} : vector<8x3xf32> to vector<8x1xf32>
    %3 = vector.extract_strided_slice %0 {offsets = [0, 0], sizes = [1, 512], strides = [1, 1]} : vector<3x512xf32> to vector<1x512xf32>
    %4 = vector.broadcast %2 : vector<8x1xf32> to vector<8x512xf32>
    %5 = vector.broadcast %3 : vector<1x512xf32> to vector<8x512xf32>
    %6 = arith.mulf %4, %5 : vector<8x512xf32>
    %7 = vector.extract_strided_slice %1 {offsets = [0, 1], sizes = [8, 1], strides = [1, 1]} : vector<8x3xf32> to vector<8x1xf32>
    %8 = vector.extract_strided_slice %0 {offsets = [1, 0], sizes = [1, 512], strides = [1, 1]} : vector<3x512xf32> to vector<1x512xf32>
    %9 = vector.broadcast %7 : vector<8x1xf32> to vector<8x512xf32>
    %10 = vector.broadcast %8 : vector<1x512xf32> to vector<8x512xf32>
    %11 = arith.mulf %9, %10 : vector<8x512xf32>
    %12 = arith.addf %6, %11 : vector<8x512xf32>
    %13 = vector.extract_strided_slice %1 {offsets = [0, 2], sizes = [8, 1], strides = [1, 1]} : vector<8x3xf32> to vector<8x1xf32>
    %14 = vector.extract_strided_slice %0 {offsets = [2, 0], sizes = [1, 512], strides = [1, 1]} : vector<3x512xf32> to vector<1x512xf32>
    %15 = vector.broadcast %13 : vector<8x1xf32> to vector<8x512xf32>
    %16 = vector.broadcast %14 : vector<1x512xf32> to vector<8x512xf32>
    %17 = arith.mulf %15, %16 : vector<8x512xf32>
    %18 = arith.addf %12, %17 : vector<8x512xf32>
    %c0_3 = arith.constant 0 : index
    %c0_4 = arith.constant 0 : index
    %19 = vector.load %arg2[%c0_3, %c0_4] : memref<8x1xf32, #tpu.memory_space<vmem>>, vector<8x1xf32>
    %20 = vector.broadcast %19 : vector<8x1xf32> to vector<8x512xf32>
    %21 = arith.addf %18, %20 : vector<8x512xf32>
    %cst = arith.constant dense<0.000000e+00> : vector<8xf32>
    %22 = vector.multi_reduction <add>, %21, %cst [1] : vector<8x512xf32> to vector<8xf32>
    %23 = vector.shape_cast %22 : vector<8xf32> to vector<8x1xf32>
    %cst_5 = arith.constant 5.120000e+02 : f32
    %24 = vector.broadcast %cst_5 : f32 to vector<8x1xf32>
    %25 = arith.divf %23, %24 : vector<8x1xf32>
    %26 = vector.broadcast %25 : vector<8x1xf32> to vector<8x512xf32>
    %27 = arith.subf %21, %26 : vector<8x512xf32>
    %28 = arith.mulf %27, %27 : vector<8x512xf32>
    %cst_6 = arith.constant dense<0.000000e+00> : vector<8xf32>
    %29 = vector.multi_reduction <add>, %28, %cst_6 [1] : vector<8x512xf32> to vector<8xf32>
    %30 = vector.shape_cast %29 : vector<8xf32> to vector<8x1xf32>
    %cst_7 = arith.constant 5.120000e+02 : f32
    %31 = vector.broadcast %cst_7 : f32 to vector<8x1xf32>
    %32 = arith.divf %30, %31 : vector<8x1xf32>
    %33 = vector.broadcast %25 : vector<8x1xf32> to vector<8x512xf32>
    %34 = arith.subf %21, %33 : vector<8x512xf32>
    %cst_8 = arith.constant 9.99999974E-6 : f32
    %35 = vector.broadcast %cst_8 : f32 to vector<8x1xf32>
    %36 = arith.addf %32, %35 : vector<8x1xf32>
    %37 = math.rsqrt %36 : vector<8x1xf32>
    %38 = vector.broadcast %37 : vector<8x1xf32> to vector<8x512xf32>
    %39 = arith.mulf %34, %38 : vector<8x512xf32>
    %c0_9 = arith.constant 0 : index
    %c0_10 = arith.constant 0 : index
    %40 = vector.load %arg3[%c0_9, %c0_10] : memref<8x1xf32, #tpu.memory_space<vmem>>, vector<8x1xf32>
    %41 = vector.broadcast %40 : vector<8x1xf32> to vector<8x512xf32>
    %42 = arith.mulf %39, %41 : vector<8x512xf32>
    %c0_11 = arith.constant 0 : index
    %c0_12 = arith.constant 0 : index
    %43 = vector.load %arg4[%c0_11, %c0_12] : memref<8x1xf32, #tpu.memory_space<vmem>>, vector<8x1xf32>
    %44 = vector.broadcast %43 : vector<8x1xf32> to vector<8x512xf32>
    %45 = arith.addf %42, %44 : vector<8x512xf32>
    %46 = vector.shape_cast %45 : vector<8x512xf32> to vector<8x2x256xf32>
    %cst_13 = arith.constant dense<0xFF800000> : vector<8x2xf32>
    %47 = vector.multi_reduction <maximumf>, %46, %cst_13 [2] : vector<8x2x256xf32> to vector<8x2xf32>
    %c0_14 = arith.constant 0 : index
    %c0_15 = arith.constant 0 : index
    %48 = vector.load %arg5[%c0_14, %c0_15] : memref<8x2xf32, #tpu.memory_space<vmem>>, vector<8x2xf32>
    tpu.vector_store %arg5[%c0_14, %c0_15], %47 {strides = array<i32>} : memref<8x2xf32, #tpu.memory_space<vmem>>, vector<8x2xf32>,
    return
  }
}

</mosaic_0001>

<bundles_post_ra>
// kernel: tpu_custom_call.1
= control target key start
LH: loop header
LB: loop body
LE: loop exit
PB: predicated region body
PF: predicated region fallthrough
CT: control target
= control target key end

     0   :  { %v472_v0 = vmov 0   ;;  %v473_v2 = vmov 2   ;;  %v474_v4 = vmov 1   ;;  %v30_v5 = vlaneseq  ;;  %s558_s1 = inlined_call_operand.vmem [shape: f32[8,3], index: 1, kind: input, shape index: {}]   ;;  %s559_s2 = inlined_call_operand.vmem [shape: f32[8,1], index: 2, kind: input, shape index: {}]   ;;  %s560_s0 = inlined_call_operand.vmem [shape: f32[3,512], index: 0, kind: input, shape index: {}]   ;;  %s561_s4 = inlined_call_operand.vmem [shape: f32[8,1], index: 4, kind: input, shape index: {}]   ;;  %s562_s3 = inlined_call_operand.vmem [shape: f32[8,1], index: 3, kind: input, shape index: {}]   ;;  %s563_s5 = inlined_call_operand.vmem [shape: f32[8,2], index: 5, kind: output, shape index: {}]  }
   0x1   :  { %465 = vset.pattern.permute.xlu0 %v472_v0  ;;  %v22_v1 = vld [vmem:[%s558_s1] sm:$0xff]  ;;  %467 = vset.pattern.permute.xlu1 %v473_v2  ;;  %v21_v10 = vld [vmem:[%s560_s0 + $0x8] sm:$0x77]  ;;  %vm355_vm0 = vcmask 1041408   ;;  %vm438_vm1 = vcmask 1041409   ;;  %vm440_vm2 = vcmask 1042434  }
   0x2   :  { %25 = vperm.xlu0 %465, %v22_v1   ;;  %119 = vperm.xlu1 %467, %v22_v1   ;;  %v166_v3 = vld [vmem:[%s559_s2] sm:$0xff]  ;;  %v515_v6 = vshrl.u32 %v30_v5, 7  ;;  %vm442_vm3 = vcmask 1043459   ;;  %vm444_vm4 = vcmask 1044484   ;;  %vm446_vm5 = vcmask 1045509  }
   0x3   :  { %v20_v9 = vld [vmem:[%s560_s0] sm:$0x77]  ;;  %vm448_vm6 = vcmask 1046534   ;;  %vm450_vm7 = vcmask 1047559   ;;  %vm453_vm8 = vcmask 15360  }
   0x4   :  { %v32_v7 = vsub.s32 0, %v515_v6  ;;  %v36_v8 = vsub.s32 4, %v515_v6  ;;  %v124_v11 = vsub.s32 2, %v515_v6  ;;  %v128_v12 = vsub.s32 6, %v515_v6 }
   0x5   :  { %v76_v13 = vsub.s32 1, %v515_v6  ;;  %v80_v14 = vsub.s32 5, %v515_v6 }
   0x6   :  { %466 = vset.pattern.permute.xlu0 %v474_v4  ;;  %468 = vset.pattern.permute.xlu1 %v472_v0  ;;  %v33_v15 = vrot.slane %v20_v9, %v32_v7  ;;  %v37_v16 = vrot.slane %v20_v9, %v36_v8  ;;  %v41_v17 = vrot.slane %v21_v10, %v32_v7 }
   0x7   :  { %71 = vperm.xlu0 %466, %v22_v1   ;;  %169 = vperm.xlu1 %468, %v166_v3   ;;  %v45_v18 = vrot.slane %v21_v10, %v36_v8  ;;  %v125_v19 = vrot.slane %v20_v9, %v124_v11  ;;  %v129_v20 = vrot.slane %v20_v9, %v128_v12  ;;  %v213_v8 = vld [vmem:[%s561_s4] sm:$0xff] }
   0x8   :  { %v133_v21 = vrot.slane %v21_v10, %v124_v11  ;;  %v77_v22 = vrot.slane %v20_v9, %v76_v13  ;;  %v81_v23 = vrot.slane %v20_v9, %v80_v14  ;;  %v85_v24 = vrot.slane %v21_v10, %v76_v13 }
   0x9   :  { %v89_v25 = vrot.slane %v21_v10, %v80_v14  ;;  %v137_v26 = vrot.slane %v21_v10, %v128_v12  ;;  %v53_v28 = vrot.slane %v33_v15, %v32_v7  ;;  %v57_v29 = vrot.slane %v37_v16, %v32_v7 }
   0xa   :  { %v61_v30 = vrot.slane %v41_v17, %v32_v7  ;;  %v65_v31 = vrot.slane %v45_v18, %v32_v7  ;;  %v145_v32 = vrot.slane %v125_v19, %v124_v11  ;;  %v149_v33 = vrot.slane %v129_v20, %v124_v11 }
   0xb   :  { %469 = vset.pattern.permute.xlu0 %v472_v0  ;;  %v153_v34 = vrot.slane %v133_v21, %v124_v11  ;;  %v97_v35 = vrot.slane %v77_v22, %v76_v13  ;;  %v101_v36 = vrot.slane %v81_v23, %v76_v13  ;;  %v105_v37 = vrot.slane %v85_v24, %v76_v13  ;;  %v203_v22 = vld [vmem:[%s562_s3] sm:$0xff] }
   0xc   :  { %v109_v38 = vrot.slane %v89_v25, %v76_v13  ;;  %v157_v40 = vrot.slane %v137_v26, %v124_v11  ;;  %v475_v26 = vmov 1983009808  }
  0x81   :  { %v26_v27 = vpop.permute.xlu0 %25  ;;  %v120_v39 = vpop.permute.xlu1 %119 }
  0x82   :  { %v66_v41 = vmul.f32 %v53_v28, %v26_v27  ;;  %v67_v42 = vmul.f32 %v57_v29, %v26_v27  ;;  %v68_v43 = vmul.f32 %v61_v30, %v26_v27  ;;  %v69_v44 = vmul.f32 %v65_v31, %v26_v27 }
  0x83   :  { %v158_v46 = vmul.f32 %v145_v32, %v120_v39  ;;  %v159_v47 = vmul.f32 %v149_v33, %v120_v39  ;;  %v160_v48 = vmul.f32 %v153_v34, %v120_v39  ;;  %v161_v53 = vmul.f32 %v157_v40, %v120_v39 }
  0x84   :  { %v225_v27 = vunpack.c.l.s4 %v475_v26  ;;  %v476_v28 = vmov 1934713408  }
  0x85   :  { %v256_v29 = vunpack.c.l.s4 %v476_v28 }
  0x86   :  { %v72_v45 = vpop.permute.xlu0 %71  ;;  %v170_v58 = vpop.permute.xlu1 %169  ;;  %v226_v32 = vunpack.c.0.s8 %v225_v27 }
  0x87   :  { %v110_v49 = vmul.f32 %v97_v35, %v72_v45  ;;  %v111_v50 = vmul.f32 %v101_v36, %v72_v45  ;;  %v112_v51 = vmul.f32 %v105_v37, %v72_v45  ;;  %v113_v52 = vmul.f32 %v109_v38, %v72_v45 }
  0x88   :  { %v257_v37 = vunpack.c.0.s8 %v256_v29 }
  0x89   :  { %v114_v54 = vadd.f32 %v110_v49, %v66_v41  ;;  %v115_v55 = vadd.f32 %v111_v50, %v67_v42  ;;  %v116_v56 = vadd.f32 %v112_v51, %v68_v43  ;;  %v117_v57 = vadd.f32 %v113_v52, %v69_v44 }
  0x8a   :  { %v229_v43 = vsub.s32 %v226_v32, %v515_v6  ;;  %v477_v49 = vmov 0.0  }
  0x8b   :  { %v162_v59 = vadd.f32 %v158_v46, %v114_v54  ;;  %v163_v60 = vadd.f32 %v159_v47, %v115_v55  ;;  %v164_v61 = vadd.f32 %v160_v48, %v116_v56  ;;  %v165_v0 = vadd.f32 %v161_v53, %v117_v57 }
  0x8c   :  { %v260_v48 = vsub.s32 %v257_v37, %v515_v6 }
  0x8d   :  { %v172_v62 = vadd.f32 %v170_v58, %v162_v59  ;;  %v173_v63 = vadd.f32 %v170_v58, %v163_v60  ;;  %v174_v1 = vadd.f32 %v170_v58, %v164_v61  ;;  %v175_v3 = vadd.f32 %v170_v58, %v165_v0 }
  0x8f   :  { %v176_v2 = vadd.f32 %v173_v63, %v172_v62 }
  0x91   :  { %v177_v4 = vadd.f32 %v176_v2, %v174_v1 }
  0x93   :  { %v178_v7 = vadd.f32 %v177_v4, %v175_v3 }
  0x95   :  { %179 = vadd.xlane.f32.xlu1 %v178_v7 }
  0xa6   :  { %216 = vperm.xlu1 %468, %v213_v8  }
 0x122   :  { %v180_v9 = vpop.xlane.xlu1 %179 }
 0x123   :  { %v182_v10 = vmul.f32 0.001953125, %v180_v9 }
 0x125   :  { %v183_v11 = vsub.f32 %v172_v62, %v182_v10  ;;  %v184_v12 = vsub.f32 %v173_v63, %v182_v10  ;;  %v185_v13 = vsub.f32 %v174_v1, %v182_v10  ;;  %v186_v14 = vsub.f32 %v175_v3, %v182_v10 }
 0x126   :  { %v217_v42 = vpop.permute.xlu1 %216 }
 0x127   :  { %v187_v15 = vmul.f32 %v183_v11, %v183_v11  ;;  %v188_v16 = vmul.f32 %v184_v12, %v184_v12  ;;  %v189_v17 = vmul.f32 %v185_v13, %v185_v13  ;;  %v190_v19 = vmul.f32 %v186_v14, %v186_v14 }
 0x129   :  { %v191_v18 = vadd.f32 %v188_v16, %v187_v15 }
 0x12b   :  { %v192_v20 = vadd.f32 %v191_v18, %v189_v17 }
 0x12d   :  { %v193_v21 = vadd.f32 %v192_v20, %v190_v19 }
 0x12f   :  { %194 = vadd.xlane.f32.xlu0 %v193_v21 }
 0x145   :  { %206 = vperm.xlu0 %469, %v203_v22  }
 0x1bc   :  { %v195_v23 = vpop.xlane.xlu0 %194 }
 0x1bd   :  { %v196_v24 = vmul.f32 0.001953125, %v195_v23 }
 0x1bf   :  { %v197_v25 = vadd.f32 1e-05, %v196_v24 }
 0x1c1   :  { %470 = vrsqrt.f32 %v197_v25 }
 0x1c4   :  { %v207_v31 = vpop.permute.xlu0 %206 }
 0x1cb   :  { %v471_v30 = vpop.eup %470 }
 0x1cc   :  { %v199_v33 = vmul.f32 %v471_v30, %v183_v11  ;;  %v200_v34 = vmul.f32 %v471_v30, %v184_v12  ;;  %v201_v35 = vmul.f32 %v471_v30, %v185_v13  ;;  %v202_v36 = vmul.f32 %v471_v30, %v186_v14 }
 0x1ce   :  { %v209_v38 = vmul.f32 %v207_v31, %v199_v33  ;;  %v210_v39 = vmul.f32 %v207_v31, %v200_v34  ;;  %v211_v40 = vmul.f32 %v207_v31, %v201_v35  ;;  %v212_v41 = vmul.f32 %v207_v31, %v202_v36 }
 0x1d0   :  { %v219_v44 = vadd.f32 %v217_v42, %v209_v38  ;;  %v220_v45 = vadd.f32 %v217_v42, %v210_v39  ;;  %v221_v46 = vadd.f32 %v217_v42, %v211_v40  ;;  %v222_v47 = vadd.f32 %v217_v42, %v212_v41 }
 0x1d2   :  { %v223_v50 = vcombine.high %v219_v44, %v477_v49  ;;  %v238_v51 = vcombine.high %v221_v46, %v477_v49  ;;  %v289_v52 = vcombine.high %v220_v45, %v477_v49  ;;  %v304_v53 = vcombine.high %v222_v47, %v477_v49 }
 0x1d3   :  { %v230_v54 = vrot.slane %v219_v44, %v229_v43  ;;  %v245_v55 = vrot.slane %v221_v46, %v229_v43  ;;  %v296_v56 = vrot.slane %v220_v45, %v229_v43  ;;  %v311_v57 = vrot.slane %v222_v47, %v229_v43 }
 0x1d4   :  { %v237_v58 = vrot.slane %v223_v50, %v229_v43  ;;  %v252_v59 = vrot.slane %v238_v51, %v229_v43  ;;  %v303_v0 = vrot.slane %v289_v52, %v229_v43  ;;  %v318_v1 = vrot.slane %v304_v53, %v229_v43 }
 0x1d5   :  { %v253_v60 = vcombine.low %v230_v54, %v245_v55  ;;  %v319_v61 = vcombine.low %v296_v56, %v311_v57  ;;  %v254_v62 = vcombine.high %v230_v54, %v245_v55  ;;  %v320_v63 = vcombine.high %v296_v56, %v311_v57 }
 0x1d6   :  { %v269_v8 = vcombine.low %v237_v58, %v252_v59  ;;  %v335_v16 = vcombine.low %v303_v0, %v318_v1  ;;  %v270_v23 = vcombine.high %v237_v58, %v252_v59  ;;  %v336_v24 = vcombine.high %v303_v0, %v318_v1 }
 0x1d7   :  { %v261_v2 = vrot.slane %v253_v60, %v260_v48  ;;  %v327_v3 = vrot.slane %v319_v61, %v260_v48  ;;  %v268_v4 = vrot.slane %v254_v62, %v260_v48  ;;  %v334_v7 = vrot.slane %v320_v63, %v260_v48 }
 0x1d8   :  { %v277_v27 = vrot.slane %v269_v8, %v260_v48  ;;  %v343_v28 = vrot.slane %v335_v16, %v260_v48  ;;  %v284_v32 = vrot.slane %v270_v23, %v260_v48  ;;  %v350_v33 = vrot.slane %v336_v24, %v260_v48 }
 0x1d9   :  { %v356_v9 = vsel %vm355_vm0, %v261_v2, -inf  ;;  %v357_v10 = vsel %vm355_vm0, %v327_v3, -inf  ;;  %v285_v11 = vcombine.high %v261_v2, %v477_v49  ;;  %v351_v12 = vcombine.high %v327_v3, %v477_v49 }
 0x1da   :  { %v358_v13 = vmax.f32 %v356_v9, %v357_v10  ;;  %v366_v14 = vsel %vm355_vm0, %v268_v4, -inf  ;;  %v367_v15 = vsel %vm355_vm0, %v334_v7, -inf  ;;  %v286_v19 = vcombine.high %v268_v4, %v477_v49 }
 0x1db   :  { %v361_v17 = vsel %vm355_vm0, %v285_v11, -inf  ;;  %v362_v18 = vsel %vm355_vm0, %v351_v12, -inf  ;;  %v352_v20 = vcombine.high %v334_v7, %v477_v49  ;;  %v368_v22 = vmax.f32 %v366_v14, %v367_v15 }
 0x1dc   :  { %359 = vmax.xlane.f32.xlu1 %v358_v13  ;;  %v363_v21 = vmax.f32 %v361_v17, %v362_v18  ;;  %v371_v25 = vsel %vm355_vm0, %v286_v19, -inf  ;;  %v376_v30 = vsel %vm355_vm0, %v277_v27, -inf  ;;  %v377_v31 = vsel %vm355_vm0, %v343_v28, -inf }
 0x1dd   :  { %v372_v26 = vsel %vm355_vm0, %v352_v20, -inf  ;;  %v378_v34 = vmax.f32 %v376_v30, %v377_v31  ;;  %v386_v35 = vsel %vm355_vm0, %v284_v32, -inf  ;;  %v387_v36 = vsel %vm355_vm0, %v350_v33, -inf }
 0x1de   :  { %364 = vmax.xlane.f32.xlu0 %v363_v21  ;;  %v373_v29 = vmax.f32 %v371_v25, %v372_v26  ;;  %v287_v37 = vcombine.high %v277_v27, %v477_v49  ;;  %v353_v38 = vcombine.high %v343_v28, %v477_v49  ;;  %v388_v39 = vmax.f32 %v386_v35, %v387_v36 }
 0x1df   :  { %v288_v42 = vcombine.high %v284_v32, %v477_v49  ;;  %v354_v43 = vcombine.high %v350_v33, %v477_v49  ;;  %v405_v51 = vand.u32 127, %v30_v5 }
 0x1e0   :  { %369 = vmax.xlane.f32.xlu1 %v368_v22  ;;  %v381_v40 = vsel %vm355_vm0, %v287_v37, -inf  ;;  %v382_v41 = vsel %vm355_vm0, %v353_v38, -inf }
 0x1e1   :  { %v383_v44 = vmax.f32 %v381_v40, %v382_v41  ;;  %v391_v45 = vsel %vm355_vm0, %v288_v42, -inf  ;;  %v392_v46 = vsel %vm355_vm0, %v354_v43, -inf  ;;  %v408_v54 = vsub.s32 %v405_v51, %v515_v6 }
 0x1e2   :  { %v393_v47 = vmax.f32 %v391_v45, %v392_v46 }
 0x1e4   :  { %374 = vmax.xlane.f32.xlu1 %v373_v29 }
 0x1e8   :  { %379 = vmax.xlane.f32.xlu1 %v378_v34 }
 0x1ec   :  { %389 = vmax.xlane.f32.xlu1 %v388_v39 }
 0x1f0   :  { %384 = vmax.xlane.f32.xlu1 %v383_v44 }
 0x1f4   :  { %394 = vmax.xlane.f32.xlu1 %v393_v47 }
 0x269   :  { %v360_v48 = vpop.xlane.xlu1 %359 }
 0x26a   :  { %v409_v49 = vrot.slane %v360_v48, %v408_v54 }
 0x26b   :  { %v365_v53 = vpop.xlane.xlu0 %364 }
 0x26c   :  { %v413_v56 = vrot.slane %v365_v53, %v408_v54 }
 0x26d   :  { %v370_v50 = vpop.xlane.xlu1 %369 }
 0x26e   :  { %v417_v57 = vrot.slane %v370_v50, %v408_v54  ;;  %v439_v59 = vsel %vm438_vm1, %v413_v56, %v409_v49 }
 0x270   :  { %v441_v62 = vsel %vm440_vm2, %v417_v57, %v439_v59 }
 0x271   :  { %v375_v52 = vpop.xlane.xlu1 %374 }
 0x272   :  { %v421_v60 = vrot.slane %v375_v52, %v408_v54 }
 0x274   :  { %v443_v5 = vsel %vm442_vm3, %v421_v60, %v441_v62 }
 0x275   :  { %v380_v55 = vpop.xlane.xlu1 %379 }
 0x276   :  { %v425_v61 = vrot.slane %v380_v55, %v408_v54 }
 0x278   :  { %v445_v1 = vsel %vm444_vm4, %v425_v61, %v443_v5 }
 0x279   :  { %v390_v58 = vpop.xlane.xlu1 %389 }
 0x27a   :  { %v433_v6 = vrot.slane %v390_v58, %v408_v54 }
 0x27d   :  { %v385_v63 = vpop.xlane.xlu1 %384 }
 0x27e   :  { %v429_v0 = vrot.slane %v385_v63, %v408_v54 }
 0x280   :  { %v447_v2 = vsel %vm446_vm5, %v429_v0, %v445_v1 }
 0x281   :  { %v395_v3 = vpop.xlane.xlu1 %394  ;;  %v449_v7 = vsel %vm448_vm6, %v433_v6, %v447_v2 }
 0x282   :  { %v437_v4 = vrot.slane %v395_v3, %v408_v54 }
 0x284   :  { %v451_v8 = vsel %vm450_vm7, %v437_v4, %v449_v7 }
 0x285   :  { %454 = vst.msk [vmem:[%s563_s5] sm:$0xff] %vm453_vm8, %v451_v8 }

</bundles_post_ra>
